<compile_context>
chip_gen: v7x
topology: tpu7x:2x2x1
jax: 0.10.0
libtpu: 0.0.40
codegen_flags: <defaults>
</compile_context>

<pallas_src>
import jax
import jax.numpy as jnp
from jax.experimental import pallas as pl
from jax.experimental.pallas import tpu as pltpu

# Slab widths tried in order.  >=128 -> lane-dense unmasked stores; the smaller
# ones are still copy-free (full-dim last axis, exempt from the /128 rule).
_WIDTHS = (1024, 512, 256, 128, 64, 32)


def _round_up(x, m):
    return ((x + m - 1) // m) * m


def _chip_defaults():
    """(block_bytes, min_grid_steps) tuned per TPU generation."""
    try:
        kind = jax.devices()[0].device_kind.lower()
    except Exception:
        kind = ""
    if "v7" in kind or "7x" in kind:
        # v7x: 2 TCs @ 3.2 TB/s -> bigger blocks (amortize ~0.35us/step) and
        # >=4 balanced grid steps so both cores get work.
        # 4 MiB x (in + out) x 2 buffers = 16 MiB < 32 MiB default scoped VMEM.
        return 4 * 1024 * 1024, 4
    # v5e/v6e: 2 MiB x 2 x 2 = 8 MiB, safely under the 16 MiB v5e default.
    return 2 * 1024 * 1024, 2


def _prox_linf_kernel(r_ref, p_ref, o_ref):
    # r_ref: (1,) float32 scalar-prefetch in SMEM; p_ref/o_ref: (rows, w) VMEM.
    # Cast r in-kernel so the VPU path stays in p's dtype (r is f32 in SMEM).
    r = r_ref[0].astype(o_ref.dtype)
    p = p_ref[...]
    # clamp(p, -r, r) == p - max(p - r, 0) + max(-p - r, 0) for finite p.
    o_ref[...] = jnp.minimum(jnp.maximum(p, -r), r)


def _project_slab(slab, r_arr, *, in_place):
    """Run the projection kernel over a 2-D (rows, width) slab view."""
    rows, width = slab.shape
    dtype = slab.dtype
    itemsize = jnp.dtype(dtype).itemsize
    block_bytes, min_steps = _chip_defaults()

    # Largest block that fits the per-block budget (sublane-multiple rows),
    # but aim for >= min_steps reasonably balanced grid steps so both v7x TCs
    # get work and input/output DMAs overlap across steps.
    max_rows = max(8, (block_bytes // (width * itemsize)) // 8 * 8)
    tgt_rows = _round_up(pl.cdiv(rows, min_steps), 8)
    block_rows = min(max_rows, tgt_rows)
    if block_rows >= rows:
        block_rows = rows  # full-dim block (exempt from the /8 rule)
    grid = (pl.cdiv(rows, block_rows),)

    n = rows * width
    cost = pl.CostEstimate(
        flops=2 * n, transcendentals=0, bytes_accessed=2 * n * itemsize)

    # TODO(synk): verify in xprof that "parallel" really shards this axis over
    # both v7x TensorCores; switch to pltpu.CORE_PARALLEL if it does not.
    return pl.pallas_call(
        _prox_linf_kernel,
        out_shape=jax.ShapeDtypeStruct((rows, width), dtype),
        grid_spec=pltpu.PrefetchScalarGridSpec(
            num_scalar_prefetch=1,  # r -> SMEM, first kernel arg
            grid=grid,
            in_specs=[pl.BlockSpec((block_rows, width), lambda i, r: (i, 0))],
            out_specs=pl.BlockSpec((block_rows, width), lambda i, r: (i, 0)),
        ),
        compiler_params=pltpu.CompilerParams(
            dimension_semantics=("parallel",)),
        cost_estimate=cost,
        # Operand 1 is the slab (operand 0 is the scalar-prefetch r).
        input_output_aliases=({1: 0} if in_place else {}),
    )(r_arr, slab)


def proximal_linf_ball(p, r, *, in_place=False):
    """Elementwise projection of p onto the L-inf ball of radius r.

    p: any-shape float array (e.g. NCHW).  r: python/JAX scalar.
    in_place=True aliases p's buffer with the output (pair with buffer
    donation at the jit boundary for true in-place parameter projection).
    """
    orig_shape = p.shape
    dtype = p.dtype
    flat = p.reshape(-1)  # free (bitcast) for a contiguous array
    n = flat.shape[0]
    r_arr = jnp.asarray(r, dtype=jnp.float32).reshape(1)  # f32 scalar in SMEM

    width = next((w for w in _WIDTHS if n % w == 0), None)
    if width is not None:
        # Common case: copy-free reshape view; ragged last row block handled by
        # pl.cdiv grid + masked boundary DMA.  No pad/slice passes over p.
        out = _project_slab(
            flat.reshape(n // width, width), r_arr, in_place=in_place)
        return out.reshape(orig_shape)

    # Rare fallback (size not divisible by 32, e.g. odd element counts): pad to
    # a full lane-dense slab.  Costs one extra read+write pass over the tensor.
    # TODO(synk): stream the ragged tail via memory_space=pl.ANY + chunked
    # pltpu.make_async_copy if this path ever matters for large tensors.
    pad = (-n) % _WIDTHS[0]
    padded = jnp.concatenate([flat, jnp.zeros((pad,), dtype=dtype)])
    out = _project_slab(
        padded.reshape((n + pad) // _WIDTHS[0], _WIDTHS[0]),
        r_arr, in_place=in_place)
    return out.reshape(-1)[:n].reshape(orig_shape)


def _reference(p, r):
    # Literal translation of the PyTorch module's formula.
    m1 = jnp.maximum(p - r, 0.0)
    m2 = jnp.maximum(-p - r, 0.0)
    return p - (m1 - m2)


if __name__ == "__main__":
    key = jax.random.PRNGKey(0)
    k1, k2, k3 = jax.random.split(key, 3)

    # NCHW tensor (2048 elements -> copy-free width-1024 slab).
    x1 = jax.random.normal(k1, (2, 4, 16, 16), dtype=jnp.float32) * 2.0
    r1 = 0.5
    y1_ref = _reference(x1, r1)
    y1 = jax.block_until_ready(proximal_linf_ball(x1, r1))
    assert y1.shape == x1.shape and y1.dtype == x1.dtype
    assert jnp.allclose(y1, y1_ref, atol=1e-5, rtol=1e-5)

    # Conv-weight-like size 64*3*7*7 = 9408 (divisible by 64, not 128):
    # copy-free width-64 slab with a ragged last row block.
    x2 = jax.random.normal(k2, (64, 3, 7, 7), dtype=jnp.float32) * 3.0
    r2 = 1.25
    y2 = jax.block_until_ready(proximal_linf_ball(x2, r2))
    assert y2.shape == x2.shape and y2.dtype == x2.dtype
    assert jnp.allclose(y2, _reference(x2, r2), atol=1e-5, rtol=1e-5)

    # Odd element count (3*5*7*11 = 1155) exercising the rare padded fallback.
    x3 = jax.random.normal(k3, (3, 5, 7, 11), dtype=jnp.float32) * 3.0
    r3 = 0.75
    y3 = jax.block_until_ready(proximal_linf_ball(x3, r3))
    assert y3.shape == x3.shape and y3.dtype == x3.dtype
    assert jnp.allclose(y3, _reference(x3, r3), atol=1e-5, rtol=1e-5)

    # Aliased (in-place-style) path; callers donate p for true buffer reuse.
    y4 = jax.block_until_ready(proximal_linf_ball(x1, r1, in_place=True))
    assert jnp.allclose(y4, y1_ref, atol=1e-5, rtol=1e-5)

    print("KERNEL_OK")
</pallas_src>

<mosaic_0001>
module attributes {stable_mosaic.version = 11 : i64} {
  func.func @_prox_linf_kernel(%arg0: i32, %arg1: memref<1xf32, #tpu.memory_space<smem>>, %arg2: memref<2x1024xf32, #tpu.memory_space<vmem>>, %arg3: memref<2x1024xf32, #tpu.memory_space<vmem>>) attributes {dimension_semantics = [#tpu.dimension_semantics<parallel>], iteration_bounds = array<i64: 1>, scalar_prefetch = 1 : i64, scratch_operands = 0 : i64, tpu.core_type = #tpu.core_type<tc>, window_params = [{transform_indices = @transform_0, window_bounds = array<i64: 2, 1024>}, {transform_indices = @transform_1, window_bounds = array<i64: 2, 1024>}]} {
    %c0 = arith.constant 0 : index
    %0 = memref.load %arg1[%c0] : memref<1xf32, #tpu.memory_space<smem>>
    %c0_0 = arith.constant 0 : index
    %c0_1 = arith.constant 0 : index
    %1 = vector.load %arg2[%c0_0, %c0_1] : memref<2x1024xf32, #tpu.memory_space<vmem>>, vector<2x1024xf32>
    %cst = arith.constant 0.000000e+00 : f32
    %2 = arith.subf %cst, %0 : f32
    %3 = vector.broadcast %2 : f32 to vector<2x1024xf32>
    %4 = arith.maximumf %1, %3 : vector<2x1024xf32>
    %5 = vector.broadcast %0 : f32 to vector<2x1024xf32>
    %6 = arith.minimumf %4, %5 : vector<2x1024xf32>
    %c0_2 = arith.constant 0 : index
    %c0_3 = arith.constant 0 : index
    %7 = vector.load %arg3[%c0_2, %c0_3] : memref<2x1024xf32, #tpu.memory_space<vmem>>, vector<2x1024xf32>
    tpu.vector_store %arg3[%c0_2, %c0_3], %6 {strides = array<i32>} : memref<2x1024xf32, #tpu.memory_space<vmem>>, vector<2x1024xf32>,
    return
  }
  func.func @transform_0(%arg0: i32, %arg1: memref<1xf32, #tpu.memory_space<smem>>) -> (i32, i32) {
    %c0_i32 = arith.constant 0 : i32
    %c0_i32_0 = arith.constant 0 : i32
    return %arg0, %c0_i32 : i32, i32
  }
  func.func @transform_1(%arg0: i32, %arg1: memref<1xf32, #tpu.memory_space<smem>>) -> (i32, i32) {
    %c0_i32 = arith.constant 0 : i32
    %c0_i32_0 = arith.constant 0 : i32
    return %arg0, %c0_i32 : i32, i32
  }
}

</mosaic_0001>

<bundles_post_ra>
// kernel: tpu_custom_call.1
= control target key start
LH: loop header
LB: loop body
LE: loop exit
PB: predicated region body
PF: predicated region fallthrough
CT: control target
= control target key end

     0   :  { %8 = vsyncpa [#allocation5], 0  ;;  %s147_s0 = inlined_call_operand.<no memory space> [shape: f32[1], index: 0, kind: input, shape index: {}]   ;;  %s148_s1 = inlined_call_operand.hbm [shape: f32[2,1024], index: 1, kind: input, shape index: {}]   ;;  %s149_s2 = inlined_call_operand.hbm [shape: f32[2,1024], index: 2, kind: output, shape index: {}]  }
   0x1   :  { %9 = vsyncpa [#allocation6], 0  ;;  %s100_s9 = smov [#allocation4]   ;;  %s52_s13 = scalar_lea.hbm %s148_s1, 256 }
   0x2   :  { %s16_s10 = sshll.u32 %s100_s9, 4  ;;  %p53_p0 = scmp.ne.s32.totalorder %s148_s1, %s52_s13  ;;  %s17_s10 = int_to_ptr.vmem [resolvable:$true] %s16_s10 }
   0x3   :  { %p56_p1 = scmp.lt.u32.totalorder %s52_s13, %s148_s1 }
   0x5   :  { %p58_p2 = pnand %p56_p1, %p53_p0 }
   0x7   :  { %61 = shalt.err (!%p58_p2)
}
   0x8   :  { %s62_s18 = scalar_lea.vmem %s17_s10, 256  ;;  %p67_p4 = scmp.lt.s32.totalorder %s17_s10, %s17_s10 }
   0x9   :  { %p63_p3 = scmp.ne.s32.totalorder %s17_s10, %s62_s18  ;;  %p68_p5 = scmp.lt.s32.totalorder %s62_s18, %s62_s18 }
   0xb   :  { %p69_p6 = por %p68_p5, %p67_p4 }
   0xd   :  { %p70_p7 = pnand %p69_p6, %p63_p3 }
   0xf   :  { %73 = shalt.err (!%p70_p7)
}
  0x10   :  { %19 = dma.hbm_to_vmem [thread:$0]  %s148_s1, 256, %s17_s10, [#allocation5]  }
  0x11   :  { %96 = dma.done.wait [#allocation5], 256  }
  0x12   :  { %97 = vsyncadd [#allocation5], 4294967040  ;;  %s26_s23 = ssub.f32 0.0, %s147_s0  ;;  %v24_v1 = vld [vmem:[#allocation4] sm:$0xff]  ;;  %v30_v2 = vstv %s147_s0  ;;  %v25_v3 = vld [vmem:[#allocation4 + $0x8] sm:$0xff]  ;;  %s101_s26 = smov [#allocation7]  }
  0x13   :  { %s41_s27 = sshll.u32 %s101_s26, 4  ;;  %s42_s27 = int_to_ptr.vmem [resolvable:$true] %s41_s27 }
  0x14   :  { %v27_v0 = vstv %s26_s23  ;;  %s74_s1 = scalar_lea.vmem %s42_s27, 256  ;;  %p79_p9 = scmp.lt.s32.totalorder %s42_s27, %s42_s27 }
  0x15   :  { %v28_v4 = vmax.f32 %v24_v1, %v27_v0  ;;  %v29_v5 = vmax.f32 %v25_v3, %v27_v0  ;;  %p75_p8 = scmp.ne.s32.totalorder %s42_s27, %s74_s1  ;;  %p80_p10 = scmp.lt.s32.totalorder %s74_s1, %s74_s1 }
  0x17   :  { %v31_v6 = vmin.f32 %v28_v4, %v30_v2  ;;  %v32_v7 = vmin.f32 %v29_v5, %v30_v2  ;;  %p81_p11 = por %p80_p10, %p79_p9 }
  0x19   :  { %33 = vst [vmem:[#allocation7] sm:$0xff] %v31_v6  ;;  %34 = vst [vmem:[#allocation7 + $0x8] sm:$0xff] %v32_v7  ;;  %p82_p12 = pnand %p81_p11, %p75_p8 }
  0x1b   :  { %85 = shalt.err (!%p82_p12)
}
  0x1c   :  { %s86_s0 = scalar_lea.hbm %s149_s2, 256 }
  0x1d   :  { %p87_p13 = scmp.ne.s32.totalorder %s149_s2, %s86_s0  ;;  %p90_p0 = scmp.lt.u32.totalorder %s86_s0, %s149_s2 }
  0x1f   :  { %p92_p1 = pnand %p90_p0, %p87_p13 }
  0x21   :  { %95 = shalt.err (!%p92_p1)
}
  0x22   :  { %44 = dma.vmem_to_hbm [thread:$0]  %s42_s27, 256, %s149_s2, [#allocation6]  }
  0x23   :  { %98 = dma.done.wait [#allocation6], 256  }
  0x24   :  { %99 = vsyncadd [#allocation6], 4294967040 }
  0x25   :  { %48 = vsyncpa [#allocation5], 1 }
  0x26   :  { %49 = vsyncpa [#allocation6], 1 }

</bundles_post_ra>
